<compile_context>
chip_gen: v7x
topology: tpu7x:2x2x1
jax: 0.10.0
libtpu: 0.0.40
codegen_flags: <defaults>
</compile_context>

<pallas_src>
import jax
import jax.numpy as jnp
from jax.experimental import pallas as pl
from jax.experimental.pallas import tpu as pltpu


LANES = 1024           # lane-dense last dim (multiple of 128) -> wide unmasked stores
MAX_TILE_ROWS = 512    # 512 * 1024 * 4 B = 2 MiB per f32 tile
_MIN_PALLAS_ELEMS = 8 * LANES   # below this, launch overhead dominates -> plain XLA


def linear_kernel(w_ref, b_ref, x_ref, o_ref):
    # w_ref, b_ref: [1] f32 scalars in SMEM (read once per grid step).
    # x_ref, o_ref: (tile_rows, LANES) VMEM tiles in the input dtype.
    # Cast-to-f32 + FMA is pure VPU work, fully hidden under the HBM DMA.
    w = w_ref[0]
    b = b_ref[0]
    y = x_ref[...].astype(jnp.float32) * w + b
    o_ref[...] = y.astype(o_ref.dtype)


def _sublane_granule(dtype):
    # f32 -> 8, bf16/f16 -> 16, int8/fp8 -> 32 (native (granule, 128) tiling).
    return max(8, 32 // jnp.dtype(dtype).itemsize)


def linear_regression_forward(x, weight, bias):
    """x: [N, 1], weight: [1, 1], bias: [1]  ->  [N, 1] in x.dtype."""
    assert x.ndim == 2 and x.shape[1] == 1, "expected nn.Linear(1,1) input [N, 1]"
    n = x.shape[0]
    orig_dtype = x.dtype

    w = weight.reshape((1,)).astype(jnp.float32)
    b = bias.reshape((1,)).astype(jnp.float32)

    def xla_fma(v):  # tiny-tail / tiny-batch path
        return (v.astype(jnp.float32) * w[0] + b[0]).astype(orig_dtype)

    # Tiny batches: fixed Pallas launch/grid-step overhead >> work; do it in XLA.
    if n < _MIN_PALLAS_ELEMS:
        return xla_fma(x)

    # Largest multiple-of-LANES prefix goes through Pallas; no padding copy.
    n_main = (n // LANES) * LANES
    rows = n_main // LANES                      # >= 8 by the threshold above

    # Tile rows: aim for >=4 grid steps (so double-buffering actually overlaps),
    # cap at 2 MiB (f32) tiles, keep the sublane granule for the dtype.
    g = _sublane_granule(orig_dtype)
    tile_rows = min(MAX_TILE_ROWS, ((pl.cdiv(rows, 4) + g - 1) // g) * g)
    grid = (pl.cdiv(rows, tile_rows),)          # partial last block is masked

    flat = x.reshape((n,))
    main = flat if n_main == n else flat[:n_main]   # prefix slice (fusible)
    slab = main.reshape((rows, LANES))               # contiguous -> free reshape

    out_slab = pl.pallas_call(
        linear_kernel,
        out_shape=jax.ShapeDtypeStruct((rows, LANES), orig_dtype),
        grid=grid,
        in_specs=[
            pl.BlockSpec(memory_space=pltpu.MemorySpace.SMEM),   # weight scalar
            pl.BlockSpec(memory_space=pltpu.MemorySpace.SMEM),   # bias scalar
            pl.BlockSpec((tile_rows, LANES), lambda i: (i, 0)),  # x tile
        ],
        out_specs=pl.BlockSpec((tile_rows, LANES), lambda i: (i, 0)),
        compiler_params=pltpu.CompilerParams(
            # Iterations are independent; annotation is harmless on 1-TC chips.
            dimension_semantics=("parallel",),
            # Let XLA fuse the prefix-slice/reshape of x into the kernel input
            # so no standalone slice copy is materialized.
            allow_input_fusion=[False, False, True],
        ),
    )(w, b, slab)

    out_main = out_slab.reshape((n_main, 1))
    if n_main == n:
        return out_main                          # zero extra HBM passes
    tail = xla_fma(x[n_main:])                   # <= LANES-1 elements
    return jnp.concatenate([out_main, tail], axis=0)


if __name__ == "__main__":
    # Deterministic nn.Linear(1, 1) parameters: W [1, 1], b [1].
    weight = jnp.array([[0.7]], dtype=jnp.float32)
    bias = jnp.array([0.3], dtype=jnp.float32)

    fwd = jax.jit(linear_regression_forward)

    # 1) N not a multiple of LANES: multi-step grid, partial (masked) last
    #    block, and the tiny XLA tail path.
    n1 = 300_001
    x1 = jax.random.normal(jax.random.PRNGKey(0), (n1, 1), dtype=jnp.float32)
    y1 = jax.block_until_ready(fwd(x1, weight, bias))
    assert y1.shape == (n1, 1) and y1.dtype == x1.dtype
    assert jnp.allclose(y1, x1 @ weight.T + bias, atol=1e-6)

    # 2) N an exact multiple of LANES: pure Pallas path, no slice/concat at all.
    n2 = 64 * 1024
    x2 = jax.random.normal(jax.random.PRNGKey(1), (n2, 1), dtype=jnp.float32)
    y2 = jax.block_until_ready(fwd(x2, weight, bias))
    assert y2.shape == (n2, 1)
    assert jnp.allclose(y2, x2 @ weight.T + bias, atol=1e-6)

    # 3) Tiny batch: plain XLA fallback.
    x3 = jax.random.normal(jax.random.PRNGKey(2), (8, 1), dtype=jnp.float32)
    y3 = jax.block_until_ready(fwd(x3, weight, bias))
    assert y3.shape == (8, 1)
    assert jnp.allclose(y3, x3 @ weight.T + bias, atol=1e-6)

    print("KERNEL_OK")
</pallas_src>

<mosaic_0001>
module attributes {stable_mosaic.version = 11 : i64} {
  func.func @linear_kernel(%arg0: i32, %arg1: memref<1xf32, #tpu.memory_space<smem>>, %arg2: memref<1xf32, #tpu.memory_space<smem>>, %arg3: memref<80x1024xf32, #tpu.memory_space<vmem>>, %arg4: memref<80x1024xf32, #tpu.memory_space<vmem>>) attributes {dimension_semantics = [#tpu.dimension_semantics<parallel>], iteration_bounds = array<i64: 4>, scalar_prefetch = 0 : i64, scratch_operands = 0 : i64, tpu.core_type = #tpu.core_type<tc>, window_params = [{transform_indices = @transform_0, window_bounds = array<i64: 1>}, {transform_indices = @transform_1, window_bounds = array<i64: 1>}, {transform_indices = @transform_2, window_bounds = array<i64: 80, 1024>}, {transform_indices = @transform_3, window_bounds = array<i64: 80, 1024>}]} {
    %c0 = arith.constant 0 : index
    %0 = memref.load %arg1[%c0] : memref<1xf32, #tpu.memory_space<smem>>
    %c0_0 = arith.constant 0 : index
    %1 = memref.load %arg2[%c0_0] : memref<1xf32, #tpu.memory_space<smem>>
    %c0_1 = arith.constant 0 : index
    %c0_2 = arith.constant 0 : index
    %2 = vector.load %arg3[%c0_1, %c0_2] : memref<80x1024xf32, #tpu.memory_space<vmem>>, vector<80x1024xf32>
    %3 = vector.broadcast %0 : f32 to vector<80x1024xf32>
    %4 = arith.mulf %2, %3 : vector<80x1024xf32>
    %5 = vector.broadcast %1 : f32 to vector<80x1024xf32>
    %6 = arith.addf %4, %5 : vector<80x1024xf32>
    %c0_3 = arith.constant 0 : index
    %c0_4 = arith.constant 0 : index
    %7 = vector.load %arg4[%c0_3, %c0_4] : memref<80x1024xf32, #tpu.memory_space<vmem>>, vector<80x1024xf32>
    tpu.vector_store %arg4[%c0_3, %c0_4], %6 {strides = array<i32>} : memref<80x1024xf32, #tpu.memory_space<vmem>>, vector<80x1024xf32>,
    return
  }
  func.func @transform_0(%arg0: i32) -> i32 {
    %c0_i32 = arith.constant 0 : i32
    %c0_i32_0 = arith.constant 0 : i32
    return %c0_i32 : i32
  }
  func.func @transform_1(%arg0: i32) -> i32 {
    %c0_i32 = arith.constant 0 : i32
    %c0_i32_0 = arith.constant 0 : i32
    return %c0_i32 : i32
  }
  func.func @transform_2(%arg0: i32) -> (i32, i32) {
    %c0_i32 = arith.constant 0 : i32
    %c0_i32_0 = arith.constant 0 : i32
    return %arg0, %c0_i32 : i32, i32
  }
  func.func @transform_3(%arg0: i32) -> (i32, i32) {
    %c0_i32 = arith.constant 0 : i32
    %c0_i32_0 = arith.constant 0 : i32
    return %arg0, %c0_i32 : i32, i32
  }
}

</mosaic_0001>

<bundles_post_ra>
// kernel: linear_regression_forward.1
= control target key start
LH: loop header
LB: loop body
LE: loop exit
PB: predicated region body
PF: predicated region fallthrough
CT: control target
= control target key end

     0   :  { %s1655_s0 = inlined_call_operand.<no memory space> [shape: f32[1], index: 0, kind: input, shape index: {}]   ;;  %s1656_s1 = inlined_call_operand.<no memory space> [shape: f32[1], index: 1, kind: input, shape index: {}]   ;;  %s1657_s2 = inlined_call_operand.vmem [shape: f32[292,1024], index: 2, kind: input, shape index: {}]   ;;  %s1658_s3 = inlined_call_operand.vmem [shape: f32[292,1024], index: 3, kind: output, shape index: {}]  }
   0x1   :  { %8 = sst [smem:[#allocation2]] %s1655_s0 }
   0x2   :  { %9 = sst [smem:[#allocation3]] %s1656_s1 }
   0x3   :  { %s1056_s16 = smov 0   ;;  %s1058_s17 = smov 0  }
   0x4   :  { %s1060_s18 = smov 0  }
   0x5 LB: > { %s1067_s0 = sadd.s32 4294967295, %s996_s18   ;;  %s1069_s1 = sadd.s32 1, %s996_s18   ;;  %s996_s18 = sphi %s1060_s18, %s1670_s18   ;;  %s992_s17 = sphi %s1058_s17, %s1669_s17   ;;  %s988_s16 = sphi %s1056_s16, %s1668_s16  }
   0x6   : > { %s87_s19 = ssub.s32 %s996_s18, %s1069_s1  ;;  %s90_s20 = sadd.s32 1, %s992_s17 }
   0x7   : > { %p88_p0 = scmp.eq.s32.totalorder %s87_s19, 0  ;;  %p100_p1 = scmp.ne.s32.totalorder %s992_s17, %s988_s16 }
   0x8   : > { %p101_p2 = scmp.eq.s32.totalorder %s1067_s0, 3  ;;  %p826_p3 = scmp.ge.s32.totalorder %s996_s18, 1 }
   0x9   : > { %s1076_s21 = scalar_select %p88_p0, %s992_s17, %s90_s20  }
   0xa   : > { %p1078_p4 = por %p101_p2, %p100_p1  ;;  %p151_p5 = scmp.lt.s32.totalorder %s996_s18, 5 }
   0xc   : > { %p152_p6 = pnand %p826_p3, %p151_p5 }
   0xd   : > { %s1083_s23 = smul.u32 (!%p152_p6), 10, %s1067_s0  ;;  %s203_s24 = sld [smem:[#allocation2]] (!%p152_p6) }
   0xe   : > { %155 = sbr.rel (%p152_p6) target bundleno = 149 (0x95), region = 32  ;;  %s204_s25 = sld [smem:[#allocation3]] (!%p152_p6) }
   0xf   : > { %p186_p7 = scmp.lt.s32.totalorder (!%p152_p6), %s1083_s23, 36  ;;  %s177_s26 = sand.u32 (!%p152_p6), 1, %s988_s16  }
  0x10   : > { %s1087_s28 = smul.u32 (!%p152_p6), 640, %s177_s26 }
  0x12   : > { %s1128_s6 = scalar_lea.vmem (!%p152_p6), [#allocation4], %s1087_s28  }
  0x13   : > { %v1094_v0 = vstv (!%p152_p6), %s203_s24 }
  0x14   : > { %v1097_v2 = vstv (!%p152_p6), %s204_s25 }
  0x15   : > { %s187_s27 = scalar_select %p186_p7, %s1083_s23, 36 }
  0x16   : > { %s535_s7 = ssub.s32 (%p1078_p4), 37, %s1083_s23  ;;  %s852_s8 = smul.u32 (%p1078_p4), 640, %s1067_s0 }
  0x17   : > { %s846_s29 = sshll.u32 %s187_s27, 6  ;;  %p536_p8 = scmp.lt.s32.totalorder (%p1078_p4), %s535_s7, 10 }
  0x18   : > { %s1092_s5 = scalar_lea.vmem %s1657_s2, %s846_s29  ;;  %s1428_s11 = scalar_lea.vmem (%p1078_p4), %s1658_s3, %s852_s8  }
  0x19   : > { %v205_v1 = vld [vmem:[%s1092_s5] sm:$0xff]  ;;  %v206_v3 = vld [vmem:[%s1092_s5 + $0x8] sm:$0xff]  ;;  %v207_v4 = vld [vmem:[%s1092_s5 + $0x10] sm:$0xff] }
  0x1a   : > { %v286_v5 = vmul.f32 %v1094_v0, %v205_v1  ;;  %v287_v6 = vmul.f32 %v1094_v0, %v206_v3  ;;  %v288_v7 = vmul.f32 %v1094_v0, %v207_v4  ;;  %v208_v8 = vld [vmem:[%s1092_s5 + $0x18] sm:$0xff]  ;;  %v209_v9 = vld [vmem:[%s1092_s5 + $0x20] sm:$0xff]  ;;  %v210_v10 = vld [vmem:[%s1092_s5 + $0x28] sm:$0xff] }
  0x1b   : > { %v289_v11 = vmul.f32 %v1094_v0, %v208_v8  ;;  %v290_v12 = vmul.f32 %v1094_v0, %v209_v9  ;;  %v291_v13 = vmul.f32 %v1094_v0, %v210_v10  ;;  %v211_v14 = vld [vmem:[%s1092_s5 + $0x30] sm:$0xff]  ;;  %v212_v15 = vld [vmem:[%s1092_s5 + $0x38] sm:$0xff]  ;;  %v213_v16 = vld [vmem:[%s1092_s5 + $0x40] sm:$0xff] }
  0x1c   : > { %v367_v17 = vadd.f32 %v1097_v2, %v286_v5  ;;  %v368_v18 = vadd.f32 %v1097_v2, %v287_v6  ;;  %v369_v19 = vadd.f32 %v1097_v2, %v288_v7  ;;  %v292_v20 = vmul.f32 %v1094_v0, %v211_v14  ;;  %v214_v21 = vld [vmem:[%s1092_s5 + $0x48] sm:$0xff]  ;;  %v215_v22 = vld [vmem:[%s1092_s5 + $0x50] sm:$0xff]  ;;  %v216_v23 = vld [vmem:[%s1092_s5 + $0x58] sm:$0xff] }
  0x1d   : > { %v370_v24 = vadd.f32 %v1097_v2, %v289_v11  ;;  %v371_v25 = vadd.f32 %v1097_v2, %v290_v12  ;;  %v372_v26 = vadd.f32 %v1097_v2, %v291_v13  ;;  %v293_v27 = vmul.f32 %v1094_v0, %v212_v15  ;;  %v217_v28 = vld [vmem:[%s1092_s5 + $0x60] sm:$0xff]  ;;  %v218_v29 = vld [vmem:[%s1092_s5 + $0x68] sm:$0xff]  ;;  %v219_v30 = vld [vmem:[%s1092_s5 + $0x70] sm:$0xff] }
  0x1e   : > { %447 = vst [vmem:[%s1128_s6] sm:$0xff] %v367_v17  ;;  %448 = vst [vmem:[%s1128_s6 + $0x8] sm:$0xff] %v368_v18  ;;  %v373_v31 = vadd.f32 %v1097_v2, %v292_v20  ;;  %v294_v32 = vmul.f32 %v1094_v0, %v213_v16  ;;  %v295_v33 = vmul.f32 %v1094_v0, %v214_v21  ;;  %v220_v35 = vld [vmem:[%s1092_s5 + $0x78] sm:$0xff]  ;;  %v221_v40 = vld [vmem:[%s1092_s5 + $0x80] sm:$0xff] }
  0x1f   : > { %449 = vst [vmem:[%s1128_s6 + $0x10] sm:$0xff] %v369_v19  ;;  %v296_v34 = vmul.f32 %v1094_v0, %v215_v22  ;;  %450 = vst [vmem:[%s1128_s6 + $0x18] sm:$0xff] %v370_v24  ;;  %v374_v36 = vadd.f32 %v1097_v2, %v293_v27  ;;  %v297_v37 = vmul.f32 %v1094_v0, %v216_v23  ;;  %v222_v41 = vld [vmem:[%s1092_s5 + $0x88] sm:$0xff]  ;;  %v223_v42 = vld [vmem:[%s1092_s5 + $0x90] sm:$0xff] }
  0x20   : > { %451 = vst [vmem:[%s1128_s6 + $0x20] sm:$0xff] %v371_v25  ;;  %452 = vst [vmem:[%s1128_s6 + $0x28] sm:$0xff] %v372_v26  ;;  %v298_v38 = vmul.f32 %v1094_v0, %v217_v28  ;;  %v299_v39 = vmul.f32 %v1094_v0, %v218_v29  ;;  %v375_v43 = vadd.f32 %v1097_v2, %v294_v32  ;;  %v224_v47 = vld [vmem:[%s1092_s5 + $0x98] sm:$0xff]  ;;  %v225_v48 = vld [vmem:[%s1092_s5 + $0xa0] sm:$0xff] }
  0x21   : > { %453 = vst [vmem:[%s1128_s6 + $0x30] sm:$0xff] %v373_v31  ;;  %v376_v44 = vadd.f32 %v1097_v2, %v295_v33  ;;  %v377_v45 = vadd.f32 %v1097_v2, %v296_v34  ;;  %v300_v46 = vmul.f32 %v1094_v0, %v219_v30  ;;  %v226_v49 = vld [vmem:[%s1092_s5 + $0xa8] sm:$0xff]  ;;  %454 = vst [vmem:[%s1128_s6 + $0x38] sm:$0xff] %v374_v36  ;;  %v227_v54 = vld [vmem:[%s1092_s5 + $0xb0] sm:$0xff] }
  0x22   : > { %v378_v50 = vadd.f32 %v1097_v2, %v297_v37  ;;  %v379_v51 = vadd.f32 %v1097_v2, %v298_v38  ;;  %v380_v52 = vadd.f32 %v1097_v2, %v299_v39  ;;  %v301_v53 = vmul.f32 %v1094_v0, %v220_v35  ;;  %455 = vst [vmem:[%s1128_s6 + $0x40] sm:$0xff] %v375_v43  ;;  %v228_v59 = vld [vmem:[%s1092_s5 + $0xb8] sm:$0xff]  ;;  %v229_v1 = vld [vmem:[%s1092_s5 + $0xc0] sm:$0xff]  ;;  %v230_v3 = vld [vmem:[%s1092_s5 + $0xc8] sm:$0xff] }
  0x23   : > { %456 = vst [vmem:[%s1128_s6 + $0x48] sm:$0xff] %v376_v44  ;;  %457 = vst [vmem:[%s1128_s6 + $0x50] sm:$0xff] %v377_v45  ;;  %v381_v55 = vadd.f32 %v1097_v2, %v300_v46  ;;  %v302_v56 = vmul.f32 %v1094_v0, %v221_v40  ;;  %v303_v57 = vmul.f32 %v1094_v0, %v222_v41  ;;  %v231_v4 = vld [vmem:[%s1092_s5 + $0xd0] sm:$0xff]  ;;  %v232_v9 = vld [vmem:[%s1092_s5 + $0xd8] sm:$0xff] }
  0x24   : > { %v304_v58 = vmul.f32 %v1094_v0, %v223_v42  ;;  %458 = vst [vmem:[%s1128_s6 + $0x58] sm:$0xff] %v378_v50  ;;  %459 = vst [vmem:[%s1128_s6 + $0x60] sm:$0xff] %v379_v51  ;;  %v382_v60 = vadd.f32 %v1097_v2, %v301_v53  ;;  %v305_v61 = vmul.f32 %v1094_v0, %v224_v47  ;;  %v233_v10 = vld [vmem:[%s1092_s5 + $0xe0] sm:$0xff]  ;;  %v234_v11 = vld [vmem:[%s1092_s5 + $0xe8] sm:$0xff] }
  0x25   : > { %460 = vst [vmem:[%s1128_s6 + $0x68] sm:$0xff] %v380_v52  ;;  %v306_v62 = vmul.f32 %v1094_v0, %v225_v48  ;;  %v307_v63 = vmul.f32 %v1094_v0, %v226_v49  ;;  %461 = vst [vmem:[%s1128_s6 + $0x70] sm:$0xff] %v381_v55  ;;  %v383_v5 = vadd.f32 %v1097_v2, %v302_v56  ;;  %v235_v16 = vld [vmem:[%s1092_s5 + $0xf0] sm:$0xff]  ;;  %v236_v21 = vld [vmem:[%s1092_s5 + $0xf8] sm:$0xff] }
  0x26   : > { %v384_v6 = vadd.f32 %v1097_v2, %v303_v57  ;;  %v385_v7 = vadd.f32 %v1097_v2, %v304_v58  ;;  %v308_v8 = vmul.f32 %v1094_v0, %v227_v54  ;;  %462 = vst [vmem:[%s1128_s6 + $0x78] sm:$0xff] %v382_v60  ;;  %v386_v12 = vadd.f32 %v1097_v2, %v305_v61  ;;  %v237_v26 = vld [vmem:[%s1092_s5 + $0x100] sm:$0xff]  ;;  %v238_v27 = vld [vmem:[%s1092_s5 + $0x108] sm:$0xff]  ;;  %v239_v28 = vld [vmem:[%s1092_s5 + $0x110] sm:$0xff] }
  0x27   : > { %v387_v13 = vadd.f32 %v1097_v2, %v306_v62  ;;  %v388_v14 = vadd.f32 %v1097_v2, %v307_v63  ;;  %v309_v15 = vmul.f32 %v1094_v0, %v228_v59  ;;  %463 = vst [vmem:[%s1128_s6 + $0x80] sm:$0xff] %v383_v5  ;;  %v310_v18 = vmul.f32 %v1094_v0, %v229_v1  ;;  %v240_v33 = vld [vmem:[%s1092_s5 + $0x118] sm:$0xff]  ;;  %v241_v34 = vld [vmem:[%s1092_s5 + $0x120] sm:$0xff]  ;;  %v242_v35 = vld [vmem:[%s1092_s5 + $0x128] sm:$0xff] }
  0x28   : > { %464 = vst [vmem:[%s1128_s6 + $0x88] sm:$0xff] %v384_v6  ;;  %465 = vst [vmem:[%s1128_s6 + $0x90] sm:$0xff] %v385_v7  ;;  %v389_v17 = vadd.f32 %v1097_v2, %v308_v8  ;;  %v311_v19 = vmul.f32 %v1094_v0, %v230_v3  ;;  %v312_v20 = vmul.f32 %v1094_v0, %v231_v4  ;;  %v243_v40 = vld [vmem:[%s1092_s5 + $0x130] sm:$0xff]  ;;  %v244_v45 = vld [vmem:[%s1092_s5 + $0x138] sm:$0xff] }
  0x29   : > { %466 = vst [vmem:[%s1128_s6 + $0x98] sm:$0xff] %v386_v12  ;;  %467 = vst [vmem:[%s1128_s6 + $0xa0] sm:$0xff] %v387_v13  ;;  %v390_v22 = vadd.f32 %v1097_v2, %v309_v15  ;;  %v313_v23 = vmul.f32 %v1094_v0, %v232_v9  ;;  %v314_v24 = vmul.f32 %v1094_v0, %v233_v10  ;;  %v245_v50 = vld [vmem:[%s1092_s5 + $0x140] sm:$0xff]  ;;  %v246_v51 = vld [vmem:[%s1092_s5 + $0x148] sm:$0xff] }
  0x2a   : > { %468 = vst [vmem:[%s1128_s6 + $0xa8] sm:$0xff] %v388_v14  ;;  %v315_v25 = vmul.f32 %v1094_v0, %v234_v11  ;;  %469 = vst [vmem:[%s1128_s6 + $0xb0] sm:$0xff] %v389_v17  ;;  %v391_v29 = vadd.f32 %v1097_v2, %v310_v18  ;;  %v392_v30 = vadd.f32 %v1097_v2, %v311_v19  ;;  %v247_v52 = vld [vmem:[%s1092_s5 + $0x150] sm:$0xff]  ;;  %v248_v57 = vld [vmem:[%s1092_s5 + $0x158] sm:$0xff] }
  0x2b   : > { %v393_v31 = vadd.f32 %v1097_v2, %v312_v20  ;;  %v316_v32 = vmul.f32 %v1094_v0, %v235_v16  ;;  %470 = vst [vmem:[%s1128_s6 + $0xb8] sm:$0xff] %v390_v22  ;;  %v394_v36 = vadd.f32 %v1097_v2, %v313_v23  ;;  %v395_v37 = vadd.f32 %v1097_v2, %v314_v24  ;;  %v249_v58 = vld [vmem:[%s1092_s5 + $0x160] sm:$0xff]  ;;  %v250_v59 = vld [vmem:[%s1092_s5 + $0x168] sm:$0xff]  ;;  %v251_v1 = vld [vmem:[%s1092_s5 + $0x170] sm:$0xff] }
  0x2c   : > { %v396_v38 = vadd.f32 %v1097_v2, %v315_v25  ;;  %v317_v39 = vmul.f32 %v1094_v0, %v236_v21  ;;  %471 = vst [vmem:[%s1128_s6 + $0xc0] sm:$0xff] %v391_v29  ;;  %472 = vst [vmem:[%s1128_s6 + $0xc8] sm:$0xff] %v392_v30  ;;  %v318_v42 = vmul.f32 %v1094_v0, %v237_v26  ;;  %v252_v7 = vld [vmem:[%s1092_s5 + $0x178] sm:$0xff]  ;;  %v253_v12 = vld [vmem:[%s1092_s5 + $0x180] sm:$0xff] }
  0x2d   : > { %473 = vst [vmem:[%s1128_s6 + $0xd0] sm:$0xff] %v393_v31  ;;  %v397_v41 = vadd.f32 %v1097_v2, %v316_v32  ;;  %v319_v43 = vmul.f32 %v1094_v0, %v238_v27  ;;  %v320_v44 = vmul.f32 %v1094_v0, %v239_v28  ;;  %474 = vst [vmem:[%s1128_s6 + $0xd8] sm:$0xff] %v394_v36  ;;  %v254_v13 = vld [vmem:[%s1092_s5 + $0x188] sm:$0xff]  ;;  %v255_v14 = vld [vmem:[%s1092_s5 + $0x190] sm:$0xff] }
  0x2e   : > { %475 = vst [vmem:[%s1128_s6 + $0xe0] sm:$0xff] %v395_v37  ;;  %476 = vst [vmem:[%s1128_s6 + $0xe8] sm:$0xff] %v396_v38  ;;  %v398_v46 = vadd.f32 %v1097_v2, %v317_v39  ;;  %v321_v47 = vmul.f32 %v1094_v0, %v240_v33  ;;  %v322_v48 = vmul.f32 %v1094_v0, %v241_v34  ;;  %v256_v19 = vld [vmem:[%s1092_s5 + $0x198] sm:$0xff]  ;;  %v257_v20 = vld [vmem:[%s1092_s5 + $0x1a0] sm:$0xff] }
  0x2f   : > { %v323_v49 = vmul.f32 %v1094_v0, %v242_v35  ;;  %477 = vst [vmem:[%s1128_s6 + $0xf0] sm:$0xff] %v397_v41  ;;  %v399_v53 = vadd.f32 %v1097_v2, %v318_v42  ;;  %v400_v54 = vadd.f32 %v1097_v2, %v319_v43  ;;  %v401_v55 = vadd.f32 %v1097_v2, %v320_v44  ;;  %v258_v21 = vld [vmem:[%s1092_s5 + $0x1a8] sm:$0xff]  ;;  %v259_v26 = vld [vmem:[%s1092_s5 + $0x1b0] sm:$0xff]  ;;  %v260_v31 = vld [vmem:[%s1092_s5 + $0x1b8] sm:$0xff] }
  0x30   : > { %v324_v56 = vmul.f32 %v1094_v0, %v243_v40  ;;  %478 = vst [vmem:[%s1128_s6 + $0xf8] sm:$0xff] %v398_v46  ;;  %v402_v60 = vadd.f32 %v1097_v2, %v321_v47  ;;  %v403_v61 = vadd.f32 %v1097_v2, %v322_v48  ;;  %v325_v63 = vmul.f32 %v1094_v0, %v244_v45  ;;  %v261_v36 = vld [vmem:[%s1092_s5 + $0x1c0] sm:$0xff]  ;;  %v262_v37 = vld [vmem:[%s1092_s5 + $0x1c8] sm:$0xff]  ;;  %v263_v38 = vld [vmem:[%s1092_s5 + $0x1d0] sm:$0xff] }
  0x31   : > { %v404_v62 = vadd.f32 %v1097_v2, %v323_v49  ;;  %479 = vst [vmem:[%s1128_s6 + $0x100] sm:$0xff] %v399_v53  ;;  %480 = vst [vmem:[%s1128_s6 + $0x108] sm:$0xff] %v400_v54  ;;  %v326_v4 = vmul.f32 %v1094_v0, %v245_v50  ;;  %v327_v5 = vmul.f32 %v1094_v0, %v246_v51  ;;  %v264_v43 = vld [vmem:[%s1092_s5 + $0x1d8] sm:$0xff]  ;;  %v265_v44 = vld [vmem:[%s1092_s5 + $0x1e0] sm:$0xff] }
  0x32   : > { %481 = vst [vmem:[%s1128_s6 + $0x110] sm:$0xff] %v401_v55  ;;  %v405_v3 = vadd.f32 %v1097_v2, %v324_v56  ;;  %v328_v6 = vmul.f32 %v1094_v0, %v247_v52  ;;  %482 = vst [vmem:[%s1128_s6 + $0x118] sm:$0xff] %v402_v60  ;;  %v406_v8 = vadd.f32 %v1097_v2, %v325_v63  ;;  %v266_v45 = vld [vmem:[%s1092_s5 + $0x1e8] sm:$0xff]  ;;  %v267_v50 = vld [vmem:[%s1092_s5 + $0x1f0] sm:$0xff] }
  0x33   : > { %483 = vst [vmem:[%s1128_s6 + $0x120] sm:$0xff] %v403_v61  ;;  %484 = vst [vmem:[%s1128_s6 + $0x128] sm:$0xff] %v404_v62  ;;  %v329_v9 = vmul.f32 %v1094_v0, %v248_v57  ;;  %v330_v10 = vmul.f32 %v1094_v0, %v249_v58  ;;  %v331_v11 = vmul.f32 %v1094_v0, %v250_v59  ;;  %v268_v55 = vld [vmem:[%s1092_s5 + $0x1f8] sm:$0xff]  ;;  %v269_v60 = vld [vmem:[%s1092_s5 + $0x200] sm:$0xff] }
  0x34   : > { %485 = vst [vmem:[%s1128_s6 + $0x130] sm:$0xff] %v405_v3  ;;  %v407_v15 = vadd.f32 %v1097_v2, %v326_v4  ;;  %v408_v16 = vadd.f32 %v1097_v2, %v327_v5  ;;  %v409_v17 = vadd.f32 %v1097_v2, %v328_v6  ;;  %v332_v18 = vmul.f32 %v1094_v0, %v251_v1  ;;  %v270_v61 = vld [vmem:[%s1092_s5 + $0x208] sm:$0xff]  ;;  %v271_v62 = vld [vmem:[%s1092_s5 + $0x210] sm:$0xff]  ;;  %v272_v5 = vld [vmem:[%s1092_s5 + $0x218] sm:$0xff] }
  0x35   : > { %486 = vst [vmem:[%s1128_s6 + $0x138] sm:$0xff] %v406_v8  ;;  %v410_v22 = vadd.f32 %v1097_v2, %v329_v9  ;;  %v411_v23 = vadd.f32 %v1097_v2, %v330_v10  ;;  %v412_v24 = vadd.f32 %v1097_v2, %v331_v11  ;;  %v333_v25 = vmul.f32 %v1094_v0, %v252_v7  ;;  %v273_v6 = vld [vmem:[%s1092_s5 + $0x220] sm:$0xff]  ;;  %v274_v7 = vld [vmem:[%s1092_s5 + $0x228] sm:$0xff] }
  0x36   : > { %487 = vst [vmem:[%s1128_s6 + $0x140] sm:$0xff] %v407_v15  ;;  %488 = vst [vmem:[%s1128_s6 + $0x148] sm:$0xff] %v408_v16  ;;  %v413_v27 = vadd.f32 %v1097_v2, %v332_v18  ;;  %v334_v28 = vmul.f32 %v1094_v0, %v253_v12  ;;  %v335_v29 = vmul.f32 %v1094_v0, %v254_v13  ;;  %v275_v12 = vld [vmem:[%s1092_s5 + $0x230] sm:$0xff] }
  0x37   : > { %489 = vst [vmem:[%s1128_s6 + $0x150] sm:$0xff] %v409_v17  ;;  %v336_v30 = vmul.f32 %v1094_v0, %v255_v14  ;;  %490 = vst [vmem:[%s1128_s6 + $0x158] sm:$0xff] %v410_v22  ;;  %v414_v32 = vadd.f32 %v1097_v2, %v333_v25  ;;  %v337_v33 = vmul.f32 %v1094_v0, %v256_v19  ;;  %v276_v17 = vld [vmem:[%s1092_s5 + $0x238] sm:$0xff]  ;;  %v277_v22 = vld [vmem:[%s1092_s5 + $0x240] sm:$0xff] }
  0x38   : > { %491 = vst [vmem:[%s1128_s6 + $0x160] sm:$0xff] %v411_v23  ;;  %492 = vst [vmem:[%s1128_s6 + $0x168] sm:$0xff] %v412_v24  ;;  %v338_v34 = vmul.f32 %v1094_v0, %v257_v20  ;;  %v339_v35 = vmul.f32 %v1094_v0, %v258_v21  ;;  %v415_v39 = vadd.f32 %v1097_v2, %v334_v28  ;;  %v278_v23 = vld [vmem:[%s1092_s5 + $0x248] sm:$0xff]  ;;  %v279_v24 = vld [vmem:[%s1092_s5 + $0x250] sm:$0xff] }
  0x39   : > { %493 = vst [vmem:[%s1128_s6 + $0x170] sm:$0xff] %v413_v27  ;;  %v416_v40 = vadd.f32 %v1097_v2, %v335_v29  ;;  %v417_v41 = vadd.f32 %v1097_v2, %v336_v30  ;;  %v340_v42 = vmul.f32 %v1094_v0, %v259_v26  ;;  %494 = vst [vmem:[%s1128_s6 + $0x178] sm:$0xff] %v414_v32  ;;  %v280_v29 = vld [vmem:[%s1092_s5 + $0x258] sm:$0xff]  ;;  %v281_v30 = vld [vmem:[%s1092_s5 + $0x260] sm:$0xff] }
  0x3a   : > { %v418_v46 = vadd.f32 %v1097_v2, %v337_v33  ;;  %v419_v47 = vadd.f32 %v1097_v2, %v338_v34  ;;  %v420_v48 = vadd.f32 %v1097_v2, %v339_v35  ;;  %v341_v49 = vmul.f32 %v1094_v0, %v260_v31  ;;  %495 = vst [vmem:[%s1128_s6 + $0x180] sm:$0xff] %v415_v39  ;;  %v282_v31 = vld [vmem:[%s1092_s5 + $0x268] sm:$0xff] }
  0x3b   : > { %496 = vst [vmem:[%s1128_s6 + $0x188] sm:$0xff] %v416_v40  ;;  %497 = vst [vmem:[%s1128_s6 + $0x190] sm:$0xff] %v417_v41  ;;  %v421_v51 = vadd.f32 %v1097_v2, %v340_v42  ;;  %v342_v52 = vmul.f32 %v1094_v0, %v261_v36  ;;  %v343_v53 = vmul.f32 %v1094_v0, %v262_v37  ;;  %v283_v36 = vld [vmem:[%s1092_s5 + $0x270] sm:$0xff]  ;;  %v284_v41 = vld [vmem:[%s1092_s5 + $0x278] sm:$0xff] }
  0x3c   : > { %v344_v54 = vmul.f32 %v1094_v0, %v263_v38  ;;  %498 = vst [vmem:[%s1128_s6 + $0x198] sm:$0xff] %v418_v46  ;;  %499 = vst [vmem:[%s1128_s6 + $0x1a0] sm:$0xff] %v419_v47  ;;  %v422_v56 = vadd.f32 %v1097_v2, %v341_v49  ;;  %v345_v57 = vmul.f32 %v1094_v0, %v264_v43 }
  0x3d   : > { %500 = vst [vmem:[%s1128_s6 + $0x1a8] sm:$0xff] %v420_v48  ;;  %v346_v58 = vmul.f32 %v1094_v0, %v265_v44  ;;  %v347_v59 = vmul.f32 %v1094_v0, %v266_v45  ;;  %501 = vst [vmem:[%s1128_s6 + $0x1b0] sm:$0xff] %v421_v51  ;;  %v423_v63 = vadd.f32 %v1097_v2, %v342_v52 }
  0x3e   : > { %v424_v1 = vadd.f32 %v1097_v2, %v343_v53  ;;  %v425_v3 = vadd.f32 %v1097_v2, %v344_v54  ;;  %v348_v4 = vmul.f32 %v1094_v0, %v267_v50  ;;  %502 = vst [vmem:[%s1128_s6 + $0x1b8] sm:$0xff] %v422_v56  ;;  %v426_v8 = vadd.f32 %v1097_v2, %v345_v57 }
  0x3f   : > { %v427_v9 = vadd.f32 %v1097_v2, %v346_v58  ;;  %v428_v10 = vadd.f32 %v1097_v2, %v347_v59  ;;  %v349_v11 = vmul.f32 %v1094_v0, %v268_v55  ;;  %503 = vst [vmem:[%s1128_s6 + $0x1c0] sm:$0xff] %v423_v63  ;;  %v350_v14 = vmul.f32 %v1094_v0, %v269_v60 }
  0x40   : > { %504 = vst [vmem:[%s1128_s6 + $0x1c8] sm:$0xff] %v424_v1  ;;  %505 = vst [vmem:[%s1128_s6 + $0x1d0] sm:$0xff] %v425_v3  ;;  %v429_v13 = vadd.f32 %v1097_v2, %v348_v4  ;;  %v351_v15 = vmul.f32 %v1094_v0, %v270_v61  ;;  %v352_v16 = vmul.f32 %v1094_v0, %v271_v62 }
  0x41   : > { %506 = vst [vmem:[%s1128_s6 + $0x1d8] sm:$0xff] %v426_v8  ;;  %507 = vst [vmem:[%s1128_s6 + $0x1e0] sm:$0xff] %v427_v9  ;;  %v430_v18 = vadd.f32 %v1097_v2, %v349_v11  ;;  %v353_v19 = vmul.f32 %v1094_v0, %v272_v5  ;;  %v354_v20 = vmul.f32 %v1094_v0, %v273_v6 }
  0x42   : > { %508 = vst [vmem:[%s1128_s6 + $0x1e8] sm:$0xff] %v428_v10  ;;  %v355_v21 = vmul.f32 %v1094_v0, %v274_v7  ;;  %509 = vst [vmem:[%s1128_s6 + $0x1f0] sm:$0xff] %v429_v13  ;;  %v431_v25 = vadd.f32 %v1097_v2, %v350_v14  ;;  %v432_v26 = vadd.f32 %v1097_v2, %v351_v15 }
  0x43   : > { %v433_v27 = vadd.f32 %v1097_v2, %v352_v16  ;;  %v356_v28 = vmul.f32 %v1094_v0, %v275_v12  ;;  %510 = vst [vmem:[%s1128_s6 + $0x1f8] sm:$0xff] %v430_v18  ;;  %v434_v32 = vadd.f32 %v1097_v2, %v353_v19  ;;  %v435_v33 = vadd.f32 %v1097_v2, %v354_v20 }
  0x44   : > { %v436_v34 = vadd.f32 %v1097_v2, %v355_v21  ;;  %v357_v35 = vmul.f32 %v1094_v0, %v276_v17  ;;  %511 = vst [vmem:[%s1128_s6 + $0x200] sm:$0xff] %v431_v25  ;;  %512 = vst [vmem:[%s1128_s6 + $0x208] sm:$0xff] %v432_v26  ;;  %v358_v38 = vmul.f32 %v1094_v0, %v277_v22 }
  0x45   : > { %513 = vst [vmem:[%s1128_s6 + $0x210] sm:$0xff] %v433_v27  ;;  %v437_v37 = vadd.f32 %v1097_v2, %v356_v28  ;;  %v359_v39 = vmul.f32 %v1094_v0, %v278_v23  ;;  %v360_v40 = vmul.f32 %v1094_v0, %v279_v24  ;;  %514 = vst [vmem:[%s1128_s6 + $0x218] sm:$0xff] %v434_v32 }
  0x46   : > { %515 = vst [vmem:[%s1128_s6 + $0x220] sm:$0xff] %v435_v33  ;;  %516 = vst [vmem:[%s1128_s6 + $0x228] sm:$0xff] %v436_v34  ;;  %v438_v42 = vadd.f32 %v1097_v2, %v357_v35  ;;  %v361_v43 = vmul.f32 %v1094_v0, %v280_v29  ;;  %v362_v44 = vmul.f32 %v1094_v0, %v281_v30  ;;  %533 = sbr.rel (!%p1078_p4) target bundleno = 149 (0x95), region = 36 }
  0x47   : > { %v363_v45 = vmul.f32 %v1094_v0, %v282_v31  ;;  %517 = vst [vmem:[%s1128_s6 + $0x230] sm:$0xff] %v437_v37  ;;  %v439_v46 = vadd.f32 %v1097_v2, %v358_v38  ;;  %v440_v47 = vadd.f32 %v1097_v2, %v359_v39  ;;  %v441_v48 = vadd.f32 %v1097_v2, %v360_v40 }
  0x48   : > { %v364_v49 = vmul.f32 %v1094_v0, %v283_v36  ;;  %518 = vst [vmem:[%s1128_s6 + $0x238] sm:$0xff] %v438_v42  ;;  %v442_v50 = vadd.f32 %v1097_v2, %v361_v43  ;;  %v443_v51 = vadd.f32 %v1097_v2, %v362_v44  ;;  %v365_v53 = vmul.f32 %v1094_v0, %v284_v41 }
  0x49   : > { %v444_v52 = vadd.f32 %v1097_v2, %v363_v45  ;;  %519 = vst [vmem:[%s1128_s6 + $0x240] sm:$0xff] %v439_v46  ;;  %520 = vst [vmem:[%s1128_s6 + $0x248] sm:$0xff] %v440_v47 }
  0x4a   : > { %521 = vst [vmem:[%s1128_s6 + $0x250] sm:$0xff] %v441_v48  ;;  %v445_v54 = vadd.f32 %v1097_v2, %v364_v49  ;;  %522 = vst [vmem:[%s1128_s6 + $0x258] sm:$0xff] %v442_v50  ;;  %v446_v55 = vadd.f32 %v1097_v2, %v365_v53 }
  0x4b   : > { %523 = vst [vmem:[%s1128_s6 + $0x260] sm:$0xff] %v443_v51  ;;  %524 = vst [vmem:[%s1128_s6 + $0x268] sm:$0xff] %v444_v52 }
  0x4c   : > { %525 = vst [vmem:[%s1128_s6 + $0x270] sm:$0xff] %v445_v54  ;;  %526 = vst [vmem:[%s1128_s6 + $0x278] sm:$0xff] %v446_v55 }
  0x4d   : > { %s1672_s7 = smov (!%p536_p8, %s535_s7), 10 }
  0x4e   : > { %s847_s12 = sshll.u32 %s1672_s7, 10 }
  0x4f   : > { %p834_p9 = scmp.eq.s32.totalorder %s847_s12, 0 }
  0x50   : > { %s1434_s13 = sshrl.u32 (!%p834_p9), %s1672_s7, 3 }
  0x51   : > { %546 = sbr.rel (%p834_p9) target bundleno = 149 (0x95), region = 40  ;;  %p835_p10 = scmp.le.s32.totalorder (!%p834_p9), %s1434_s13, 0 }
  0x58   : > { %779 = sbr.rel (%p835_p10) target bundleno = 128 (0x80), region = 88  ;;  %s1660_s14 = smov (!%p835_p10), %s1428_s11 }
  0x59   : > { %s1661_s15 = smov (!%p835_p10), %s1128_s6  ;;  %s1443_s16 = smov (!%p835_p10), 0  }
  0x5a   : > { %s1445_s18 = smov (!%p835_p10), 0  }
  0x5f LB: >> { %v559_v0 = vld [vmem:[%s1004_s15] sm:$0xff]  ;;  %s687_s0 = sadd.s32 1, %s1008_s16  ;;  %v575_v62 = vld [vmem:[%s1004_s15 + $0x8] sm:$0xff]  ;;  %v591_v8 = vld [vmem:[%s1004_s15 + $0x10] sm:$0xff]  ;;  %s553_s18 = sadd.s32 1, %s1012_s18   ;;  %s1012_s18 = sphi %s1445_s18, %s553_s18   ;;  %s1008_s16 = sphi %s1443_s16, %s1664_s16   ;;  %s1004_s15 = sphi %s1661_s15, %s1663_s15   ;;  %s1000_s14 = sphi %s1660_s14, %s1662_s14  }
  0x60   : >> { %v561_v2 = vld [vmem:[%s1004_s15 + $0x40] sm:$0xff]  ;;  %560 = vst [vmem:[%s1000_s14] sm:$0xff] %v559_v0  ;;  %p688_p11 = scmp.ge.s32.totalorder %s687_s0, %s1434_s13  ;;  %576 = vst [vmem:[%s1000_s14 + $0x8] sm:$0xff] %v575_v62  ;;  %v577_v63 = vld [vmem:[%s1004_s15 + $0x48] sm:$0xff]  ;;  %p552_p12 = scmp.ge.s32.totalorder %s553_s18, %s1434_s13 }
  0x61   : >> { %v563_v56 = vld [vmem:[%s1004_s15 + $0x80] sm:$0xff]  ;;  %562 = vst [vmem:[%s1000_s14 + $0x40] sm:$0xff] %v561_v2  ;;  %v579_v1 = vld [vmem:[%s1004_s15 + $0x88] sm:$0xff]  ;;  %578 = vst [vmem:[%s1000_s14 + $0x48] sm:$0xff] %v577_v63 }
  0x62   : >> { %564 = vst [vmem:[%s1000_s14 + $0x80] sm:$0xff] %v563_v56  ;;  %v565_v57 = vld [vmem:[%s1004_s15 + $0xc0] sm:$0xff]  ;;  %v581_v3 = vld [vmem:[%s1004_s15 + $0xc8] sm:$0xff]  ;;  %s1674_s0 = smov (%p688_p11, %s687_s0), 0  ;;  %580 = vst [vmem:[%s1000_s14 + $0x88] sm:$0xff] %v579_v1 }
  0x63   : >> { %v567_v58 = vld [vmem:[%s1004_s15 + $0x100] sm:$0xff]  ;;  %566 = vst [vmem:[%s1000_s14 + $0xc0] sm:$0xff] %v565_v57  ;;  %582 = vst [vmem:[%s1000_s14 + $0xc8] sm:$0xff] %v581_v3  ;;  %v583_v4 = vld [vmem:[%s1004_s15 + $0x108] sm:$0xff]  ;;  %s836_s19 = sshll.u32 %s1674_s0, 9  ;;  %s1664_s16 = smov %s1674_s0 }
  0x64   : >> { %v569_v59 = vld [vmem:[%s1004_s15 + $0x140] sm:$0xff]  ;;  %568 = vst [vmem:[%s1000_s14 + $0x100] sm:$0xff] %v567_v58  ;;  %v585_v5 = vld [vmem:[%s1004_s15 + $0x148] sm:$0xff]  ;;  %584 = vst [vmem:[%s1000_s14 + $0x108] sm:$0xff] %v583_v4  ;;  %s1501_s20 = scalar_lea.vmem %s1128_s6, %s836_s19 [#allocation4]   ;;  %s1504_s22 = scalar_lea.vmem %s1428_s11, %s836_s19  }
  0x65   : >> { %570 = vst [vmem:[%s1000_s14 + $0x140] sm:$0xff] %v569_v59  ;;  %v571_v60 = vld [vmem:[%s1004_s15 + $0x180] sm:$0xff]  ;;  %v587_v6 = vld [vmem:[%s1004_s15 + $0x188] sm:$0xff]  ;;  %586 = vst [vmem:[%s1000_s14 + $0x148] sm:$0xff] %v585_v5 }
  0x66   : >> { %v573_v61 = vld [vmem:[%s1004_s15 + $0x1c0] sm:$0xff]  ;;  %572 = vst [vmem:[%s1000_s14 + $0x180] sm:$0xff] %v571_v60  ;;  %588 = vst [vmem:[%s1000_s14 + $0x188] sm:$0xff] %v587_v6  ;;  %v589_v7 = vld [vmem:[%s1004_s15 + $0x1c8] sm:$0xff] }
  0x67   : >> { %574 = vst [vmem:[%s1000_s14 + $0x1c0] sm:$0xff] %v573_v61  ;;  %v593_v9 = vld [vmem:[%s1004_s15 + $0x50] sm:$0xff]  ;;  %590 = vst [vmem:[%s1000_s14 + $0x1c8] sm:$0xff] %v589_v7  ;;  %v607_v16 = vld [vmem:[%s1004_s15 + $0x18] sm:$0xff] }
  0x68   : >> { %592 = vst [vmem:[%s1000_s14 + $0x10] sm:$0xff] %v591_v8  ;;  %594 = vst [vmem:[%s1000_s14 + $0x50] sm:$0xff] %v593_v9  ;;  %v595_v10 = vld [vmem:[%s1004_s15 + $0x90] sm:$0xff]  ;;  %v609_v17 = vld [vmem:[%s1004_s15 + $0x58] sm:$0xff] }
  0x69   : >> { %v597_v11 = vld [vmem:[%s1004_s15 + $0xd0] sm:$0xff]  ;;  %596 = vst [vmem:[%s1000_s14 + $0x90] sm:$0xff] %v595_v10  ;;  %v611_v18 = vld [vmem:[%s1004_s15 + $0x98] sm:$0xff]  ;;  %608 = vst [vmem:[%s1000_s14 + $0x18] sm:$0xff] %v607_v16 }
  0x6a   : >> { %v599_v12 = vld [vmem:[%s1004_s15 + $0x110] sm:$0xff]  ;;  %598 = vst [vmem:[%s1000_s14 + $0xd0] sm:$0xff] %v597_v11  ;;  %610 = vst [vmem:[%s1000_s14 + $0x58] sm:$0xff] %v609_v17  ;;  %v613_v19 = vld [vmem:[%s1004_s15 + $0xd8] sm:$0xff] }
  0x6b   : >> { %600 = vst [vmem:[%s1000_s14 + $0x110] sm:$0xff] %v599_v12  ;;  %v601_v13 = vld [vmem:[%s1004_s15 + $0x150] sm:$0xff]  ;;  %612 = vst [vmem:[%s1000_s14 + $0x98] sm:$0xff] %v611_v18  ;;  %v615_v20 = vld [vmem:[%s1004_s15 + $0x118] sm:$0xff] }
  0x6c   : >> { %v603_v14 = vld [vmem:[%s1004_s15 + $0x190] sm:$0xff]  ;;  %602 = vst [vmem:[%s1000_s14 + $0x150] sm:$0xff] %v601_v13  ;;  %v617_v21 = vld [vmem:[%s1004_s15 + $0x158] sm:$0xff]  ;;  %614 = vst [vmem:[%s1000_s14 + $0xd8] sm:$0xff] %v613_v19 }
  0x6d   : >> { %v605_v15 = vld [vmem:[%s1004_s15 + $0x1d0] sm:$0xff]  ;;  %604 = vst [vmem:[%s1000_s14 + $0x190] sm:$0xff] %v603_v14  ;;  %616 = vst [vmem:[%s1000_s14 + $0x118] sm:$0xff] %v615_v20  ;;  %v619_v22 = vld [vmem:[%s1004_s15 + $0x198] sm:$0xff] }
  0x6e   : >> { %606 = vst [vmem:[%s1000_s14 + $0x1d0] sm:$0xff] %v605_v15  ;;  %618 = vst [vmem:[%s1000_s14 + $0x158] sm:$0xff] %v617_v21  ;;  %v621_v23 = vld [vmem:[%s1004_s15 + $0x1d8] sm:$0xff]  ;;  %v623_v24 = vld [vmem:[%s1004_s15 + $0x20] sm:$0xff] }
  0x6f   : >> { %620 = vst [vmem:[%s1000_s14 + $0x198] sm:$0xff] %v619_v22  ;;  %622 = vst [vmem:[%s1000_s14 + $0x1d8] sm:$0xff] %v621_v23  ;;  %v625_v25 = vld [vmem:[%s1004_s15 + $0x60] sm:$0xff]  ;;  %v639_v32 = vld [vmem:[%s1004_s15 + $0x28] sm:$0xff] }
  0x70   : >> { %624 = vst [vmem:[%s1000_s14 + $0x20] sm:$0xff] %v623_v24  ;;  %v627_v26 = vld [vmem:[%s1004_s15 + $0xa0] sm:$0xff]  ;;  %626 = vst [vmem:[%s1000_s14 + $0x60] sm:$0xff] %v625_v25  ;;  %v641_v33 = vld [vmem:[%s1004_s15 + $0x68] sm:$0xff] }
  0x71   : >> { %v629_v27 = vld [vmem:[%s1004_s15 + $0xe0] sm:$0xff]  ;;  %628 = vst [vmem:[%s1000_s14 + $0xa0] sm:$0xff] %v627_v26  ;;  %640 = vst [vmem:[%s1000_s14 + $0x28] sm:$0xff] %v639_v32  ;;  %v643_v34 = vld [vmem:[%s1004_s15 + $0xa8] sm:$0xff] }
  0x72   : >> { %630 = vst [vmem:[%s1000_s14 + $0xe0] sm:$0xff] %v629_v27  ;;  %v631_v28 = vld [vmem:[%s1004_s15 + $0x120] sm:$0xff]  ;;  %642 = vst [vmem:[%s1000_s14 + $0x68] sm:$0xff] %v641_v33  ;;  %v645_v35 = vld [vmem:[%s1004_s15 + $0xe8] sm:$0xff] }
  0x73   : >> { %v633_v29 = vld [vmem:[%s1004_s15 + $0x160] sm:$0xff]  ;;  %632 = vst [vmem:[%s1000_s14 + $0x120] sm:$0xff] %v631_v28  ;;  %v647_v36 = vld [vmem:[%s1004_s15 + $0x128] sm:$0xff]  ;;  %644 = vst [vmem:[%s1000_s14 + $0xa8] sm:$0xff] %v643_v34 }
  0x74   : >> { %v635_v30 = vld [vmem:[%s1004_s15 + $0x1a0] sm:$0xff]  ;;  %634 = vst [vmem:[%s1000_s14 + $0x160] sm:$0xff] %v633_v29  ;;  %646 = vst [vmem:[%s1000_s14 + $0xe8] sm:$0xff] %v645_v35  ;;  %v649_v37 = vld [vmem:[%s1004_s15 + $0x168] sm:$0xff] }
  0x75   : >> { %636 = vst [vmem:[%s1000_s14 + $0x1a0] sm:$0xff] %v635_v30  ;;  %v637_v31 = vld [vmem:[%s1004_s15 + $0x1e0] sm:$0xff]  ;;  %648 = vst [vmem:[%s1000_s14 + $0x128] sm:$0xff] %v647_v36  ;;  %v651_v38 = vld [vmem:[%s1004_s15 + $0x1a8] sm:$0xff] }
  0x76   : >> { %638 = vst [vmem:[%s1000_s14 + $0x1e0] sm:$0xff] %v637_v31  ;;  %v653_v39 = vld [vmem:[%s1004_s15 + $0x1e8] sm:$0xff]  ;;  %650 = vst [vmem:[%s1000_s14 + $0x168] sm:$0xff] %v649_v37  ;;  %v655_v40 = vld [vmem:[%s1004_s15 + $0x30] sm:$0xff] }
  0x77   : >> { %652 = vst [vmem:[%s1000_s14 + $0x1a8] sm:$0xff] %v651_v38  ;;  %654 = vst [vmem:[%s1000_s14 + $0x1e8] sm:$0xff] %v653_v39  ;;  %v657_v41 = vld [vmem:[%s1004_s15 + $0x70] sm:$0xff]  ;;  %v671_v48 = vld [vmem:[%s1004_s15 + $0x38] sm:$0xff] }
  0x78   : >> { %v659_v42 = vld [vmem:[%s1004_s15 + $0xb0] sm:$0xff]  ;;  %656 = vst [vmem:[%s1000_s14 + $0x30] sm:$0xff] %v655_v40  ;;  %658 = vst [vmem:[%s1000_s14 + $0x70] sm:$0xff] %v657_v41  ;;  %v673_v49 = vld [vmem:[%s1004_s15 + $0x78] sm:$0xff] }
  0x79   : >> { %660 = vst [vmem:[%s1000_s14 + $0xb0] sm:$0xff] %v659_v42  ;;  %v661_v43 = vld [vmem:[%s1004_s15 + $0xf0] sm:$0xff]  ;;  %672 = vst [vmem:[%s1000_s14 + $0x38] sm:$0xff] %v671_v48  ;;  %v675_v50 = vld [vmem:[%s1004_s15 + $0xb8] sm:$0xff]  ;;  %555 = sbr.rel (!%p552_p12) target bundleno = 95 (0x5f), region = 94 }
  0x7a   : >> { %v663_v44 = vld [vmem:[%s1004_s15 + $0x130] sm:$0xff]  ;;  %662 = vst [vmem:[%s1000_s14 + $0xf0] sm:$0xff] %v661_v43  ;;  %v677_v51 = vld [vmem:[%s1004_s15 + $0xf8] sm:$0xff]  ;;  %674 = vst [vmem:[%s1000_s14 + $0x78] sm:$0xff] %v673_v49 }
  0x7b   : >> { %v665_v45 = vld [vmem:[%s1004_s15 + $0x170] sm:$0xff]  ;;  %664 = vst [vmem:[%s1000_s14 + $0x130] sm:$0xff] %v663_v44  ;;  %676 = vst [vmem:[%s1000_s14 + $0xb8] sm:$0xff] %v675_v50  ;;  %v679_v52 = vld [vmem:[%s1004_s15 + $0x138] sm:$0xff] }
  0x7c   : >> { %666 = vst [vmem:[%s1000_s14 + $0x170] sm:$0xff] %v665_v45  ;;  %v667_v46 = vld [vmem:[%s1004_s15 + $0x1b0] sm:$0xff]  ;;  %678 = vst [vmem:[%s1000_s14 + $0xf8] sm:$0xff] %v677_v51  ;;  %v681_v53 = vld [vmem:[%s1004_s15 + $0x178] sm:$0xff] }
  0x7d   : >> { %v669_v47 = vld [vmem:[%s1004_s15 + $0x1f0] sm:$0xff]  ;;  %668 = vst [vmem:[%s1000_s14 + $0x1b0] sm:$0xff] %v667_v46  ;;  %v683_v54 = vld [vmem:[%s1004_s15 + $0x1b8] sm:$0xff]  ;;  %680 = vst [vmem:[%s1000_s14 + $0x138] sm:$0xff] %v679_v52 }
  0x7e   : >> { %670 = vst [vmem:[%s1000_s14 + $0x1f0] sm:$0xff] %v669_v47  ;;  %682 = vst [vmem:[%s1000_s14 + $0x178] sm:$0xff] %v681_v53  ;;  %v685_v55 = vld [vmem:[%s1004_s15 + $0x1f8] sm:$0xff]  ;;  %s1663_s15 = smov %s1501_s20 }
  0x7f   : >> { %684 = vst [vmem:[%s1000_s14 + $0x1b8] sm:$0xff] %v683_v54  ;;  %686 = vst [vmem:[%s1000_s14 + $0x1f8] sm:$0xff] %v685_v55  ;;  %s1662_s14 = smov %s1504_s22 }
  0x80 PF: > { %s1609_s23 = sand.u32 7, %s1672_s7   ;;  %s850_s24 = sshll.u32 %s1434_s13, 9 }
  0x81   : > { %s1613_s25 = scalar_lea.vmem %s1128_s6, %s850_s24 [#allocation4]   ;;  %s1616_s26 = scalar_lea.vmem %s1428_s11, %s850_s24  }
  0x82   : > { %p841_p13 = scmp.le.s32.totalorder %s1609_s23, 0 }
  0x83   : > { %s1665_s27 = smov (!%p841_p13), %s1616_s26  ;;  %s1666_s28 = smov (!%p841_p13), %s1613_s25 }
  0x84   : > { %793 = sbr.rel (%p841_p13) target bundleno = 149 (0x95), region = 99  ;;  %s1625_s29 = smov (!%p841_p13), 0  }
  0x85   : > { %s1627_s30 = smov (!%p841_p13), 0  }
  0x8b LB: >> { %v710_v0 = vld [vmem:[%s1020_s28] sm:$0xff]  ;;  %v712_v2 = vld [vmem:[%s1020_s28 + $0x8] sm:$0xff]  ;;  %v714_v56 = vld [vmem:[%s1020_s28 + $0x10] sm:$0xff]  ;;  %s726_s4 = sadd.s32 1, %s1024_s29  ;;  %s704_s30 = sadd.s32 1, %s1028_s30   ;;  %s1028_s30 = sphi %s1627_s30, %s704_s30   ;;  %s1024_s29 = sphi %s1625_s29, %s1667_s29   ;;  %s1020_s28 = sphi %s1666_s28, %s731_s28   ;;  %s1016_s27 = sphi %s1665_s27, %s732_s27  }
  0x8c   : >> { %711 = vst [vmem:[%s1016_s27] sm:$0xff] %v710_v0  ;;  %713 = vst [vmem:[%s1016_s27 + $0x8] sm:$0xff] %v712_v2  ;;  %v716_v57 = vld [vmem:[%s1020_s28 + $0x18] sm:$0xff]  ;;  %v718_v58 = vld [vmem:[%s1020_s28 + $0x20] sm:$0xff]  ;;  %p727_p0 = scmp.ge.s32.totalorder %s726_s4, %s1609_s23  ;;  %p703_p1 = scmp.ge.s32.totalorder %s704_s30, %s1609_s23 }
  0x8d   : >> { %715 = vst [vmem:[%s1016_s27 + $0x10] sm:$0xff] %v714_v56  ;;  %v720_v59 = vld [vmem:[%s1020_s28 + $0x28] sm:$0xff]  ;;  %717 = vst [vmem:[%s1016_s27 + $0x18] sm:$0xff] %v716_v57  ;;  %v722_v60 = vld [vmem:[%s1020_s28 + $0x30] sm:$0xff] }
  0x8e   : >> { %719 = vst [vmem:[%s1016_s27 + $0x20] sm:$0xff] %v718_v58  ;;  %721 = vst [vmem:[%s1016_s27 + $0x28] sm:$0xff] %v720_v59  ;;  %v724_v61 = vld [vmem:[%s1020_s28 + $0x38] sm:$0xff]  ;;  %s1676_s4 = smov (%p727_p0, %s726_s4), 0  ;;  %706 = sbr.rel (!%p703_p1) target bundleno = 139 (0x8b), region = 105 }
  0x8f   : >> { %723 = vst [vmem:[%s1016_s27 + $0x30] sm:$0xff] %v722_v60  ;;  %725 = vst [vmem:[%s1016_s27 + $0x38] sm:$0xff] %v724_v61  ;;  %s842_s5 = sshll.u32 %s1676_s4, 6  ;;  %s1667_s29 = smov %s1676_s4 }
  0x90   : >> { %s731_s28 = scalar_lea.vmem %s1613_s25, %s842_s5 [#allocation4]   ;;  %s732_s27 = scalar_lea.vmem %s1616_s26, %s842_s5  }
  0x95 PF: > { %p12_p2 = scmp.ge.s32.totalorder %s1069_s1, 6   ;;  %s1668_s16 = smov %s992_s17 }
  0x96   : > { %s1669_s17 = smov %s1076_s21  ;;  %s1670_s18 = smov %s1069_s1 }
  0x97   :  { %14 = sbr.rel (!%p12_p2) target bundleno = 5 (0x5), region = 116 }

</bundles_post_ra>
